<compile_context>
chip_gen: v6e
topology: v6e:2x2x1
jax: 0.10.0
libtpu: 0.0.40
codegen_flags: <defaults>
</compile_context>

<pallas_src>
import functools

import jax
import jax.numpy as jnp
from jax.experimental import pallas as pl
from jax.experimental.pallas import tpu as pltpu

INPUT_DIM = 8
HDIM_1 = 8
OUTPUT_DIM = 4

_INTERLEAVE = 32                          # samples interleaved per block row
_IN_LANES = _INTERLEAVE * INPUT_DIM       # 256 lanes per input row
_OUT_LANES = _INTERLEAVE * OUTPUT_DIM     # 128 lanes per output row (full vreg width)
_SUBLANE = 8
_BATCH_GRAIN = _INTERLEAVE * _SUBLANE     # 256 samples = one (8, 256) row group
_TARGET_TILE_ROWS = 2048                  # ~2 MiB input / ~1 MiB output per grid step


def _round_up(n, m):
    return -(-n // m) * m


def _mlp_kernel(w1_ref, b1_ref, w2_ref, b2_ref, x_ref, o_ref):
    """One batch tile: x (tile_rows, 256) -> out (tile_rows, 128).

    Each 256-lane input row holds 32 samples x 8 features; the block-diagonal
    packed weights keep the 32 samples independent, so two dense MXU matmuls
    compute fc1/fc2 for all of them at full lane width.  VPU only does
    bias-add + ReLU.
    """
    x = x_ref[...]                                                  # (tr, 256) f32
    h = jnp.dot(x, w1_ref[...], preferred_element_type=jnp.float32)
    h = jnp.maximum(h + b1_ref[...], 0.0)
    out = jnp.dot(h, w2_ref[...], preferred_element_type=jnp.float32)
    o_ref[...] = (out + b2_ref[...]).astype(o_ref.dtype)


def pack_params(w1, b1, w2, b2):
    """PyTorch-layout params (weight = (out, in)) -> MXU-friendly packed form.

    Returns (W1_big, b1_big, W2_big, b2_big):
      W1_big (256, 256) = kron(I_32, W1.T), W2_big (256, 128) = kron(I_32, W2.T),
      b1_big (1, 256) / b2_big (1, 128) lane-tiled biases.  Built once, outside
      the kernel.
    """
    eye = jnp.eye(_INTERLEAVE, dtype=jnp.float32)
    w1_big = jnp.kron(eye, w1.astype(jnp.float32).T)                # (256, 256)
    w2_big = jnp.kron(eye, w2.astype(jnp.float32).T)                # (256, 128)
    b1_big = jnp.tile(b1.astype(jnp.float32), _INTERLEAVE)[None, :]  # (1, 256)
    b2_big = jnp.tile(b2.astype(jnp.float32), _INTERLEAVE)[None, :]  # (1, 128)
    return w1_big, b1_big, w2_big, b2_big


def _choose_tiling(batch):
    """Static tiling choice: (padded batch, rows, tile_rows, n_tiles)."""
    rows = _round_up(max(batch, 1), _BATCH_GRAIN) // _INTERLEAVE     # multiple of 8
    n_tiles = max(1, -(-rows // _TARGET_TILE_ROWS))
    if rows >= 2 * _SUBLANE:
        n_tiles = max(n_tiles, 2)      # keep both v7x TensorCores busy
    if n_tiles > 1 and n_tiles % 2:
        n_tiles += 1                   # even grid -> balanced megacore split
    tile_rows = _round_up(-(-rows // n_tiles), _SUBLANE)
    rows = tile_rows * n_tiles
    return rows * _INTERLEAVE, rows, tile_rows, n_tiles


@jax.jit
def lunar_lander_ann_forward(x, packed_params):
    """x: (B, 8) float32, packed_params from pack_params() -> (B, 4) float32."""
    w1_big, b1_big, w2_big, b2_big = packed_params
    batch = x.shape[0]
    b_pad, rows, tile_rows, n_tiles = _choose_tiling(batch)

    # Pad (no-op when batch already aligned) and take the free interleaved view.
    x_pad = x if b_pad == batch else jnp.pad(x, ((0, b_pad - batch), (0, 0)))
    x_view = x_pad.reshape(rows, _IN_LANES)          # contiguity-preserving reshape

    out_view = pl.pallas_call(
        _mlp_kernel,
        out_shape=jax.ShapeDtypeStruct((rows, _OUT_LANES), x.dtype),
        grid=(n_tiles,),
        in_specs=[
            # Packed params: constant block index -> single DMA, VMEM resident.
            pl.BlockSpec((_IN_LANES, _IN_LANES), lambda i: (0, 0)),
            pl.BlockSpec((1, _IN_LANES), lambda i: (0, 0)),
            pl.BlockSpec((_IN_LANES, _OUT_LANES), lambda i: (0, 0)),
            pl.BlockSpec((1, _OUT_LANES), lambda i: (0, 0)),
            # Activations: batch tiled along sublanes, lane-dense 256-wide rows.
            pl.BlockSpec((tile_rows, _IN_LANES), lambda i: (i, 0)),
        ],
        out_specs=pl.BlockSpec((tile_rows, _OUT_LANES), lambda i: (i, 0)),
        compiler_params=pltpu.CompilerParams(
            dimension_semantics=("parallel",)),      # both TCs on v7x
    )(w1_big, b1_big, w2_big, b2_big, x_view)

    out = out_view.reshape(b_pad, OUTPUT_DIM)        # free reshape back to (B_pad, 4)
    return out if b_pad == batch else out[:batch]


def init_params(key):
    """Deterministic init mirroring the PyTorch module's __init__.

    fc1.weight, fc2.weight ~ U(-1, 1)  (explicit torch.nn.init.uniform_)
    biases ~ U(-1/sqrt(fan_in), 1/sqrt(fan_in))  (PyTorch nn.Linear default)
    Weights use PyTorch layout: (out_features, in_features).
    """
    k1, k2, k3, k4 = jax.random.split(key, 4)
    w1 = jax.random.uniform(k1, (HDIM_1, INPUT_DIM), jnp.float32, -1.0, 1.0)
    b1_bound = 1.0 / jnp.sqrt(float(INPUT_DIM))
    b1 = jax.random.uniform(k2, (HDIM_1,), jnp.float32, -b1_bound, b1_bound)
    w2 = jax.random.uniform(k3, (OUTPUT_DIM, HDIM_1), jnp.float32, -1.0, 1.0)
    b2_bound = 1.0 / jnp.sqrt(float(HDIM_1))
    b2 = jax.random.uniform(k4, (OUTPUT_DIM,), jnp.float32, -b2_bound, b2_bound)
    return w1, b1, w2, b2


def _reference_forward(x, w1, b1, w2, b2):
    h = jnp.maximum(x @ w1.T + b1, 0.0)
    return h @ w2.T + b2


if __name__ == "__main__":
    key = jax.random.PRNGKey(0)
    pkey, xkey1, xkey2 = jax.random.split(key, 3)
    w1, b1, w2, b2 = init_params(pkey)
    packed = pack_params(w1, b1, w2, b2)

    # Tolerance leaves headroom for MXU f32-pass differences across TPU
    # generations; observed error on the f32 path is ~1e-6.
    TOL = dict(atol=2e-3, rtol=2e-3)

    # Small batch of LunarLander observations (8-dim state vectors).
    x_small = jax.random.normal(xkey1, (8, INPUT_DIM), jnp.float32)
    out_small = jax.block_until_ready(lunar_lander_ann_forward(x_small, packed))
    ref_small = _reference_forward(x_small, w1, b1, w2, b2)
    assert out_small.shape == (8, OUTPUT_DIM)
    assert jnp.allclose(out_small, ref_small, **TOL)

    # Larger ragged batch: exercises padding, multi-tile grid and megacore split.
    x_big = jax.random.normal(xkey2, (3000, INPUT_DIM), jnp.float32)
    out_big = jax.block_until_ready(lunar_lander_ann_forward(x_big, packed))
    ref_big = _reference_forward(x_big, w1, b1, w2, b2)
    assert out_big.shape == (3000, OUTPUT_DIM)
    assert jnp.allclose(out_big, ref_big, **TOL)

    print("KERNEL_OK")
</pallas_src>

<mosaic_0001>
module attributes {stable_mosaic.version = 11 : i64} {
  func.func @_mlp_kernel(%arg0: i32, %arg1: memref<256x256xf32, #tpu.memory_space<vmem>>, %arg2: memref<1x256xf32, #tpu.memory_space<vmem>>, %arg3: memref<256x128xf32, #tpu.memory_space<vmem>>, %arg4: memref<1x128xf32, #tpu.memory_space<vmem>>, %arg5: memref<8x256xf32, #tpu.memory_space<vmem>>, %arg6: memref<8x128xf32, #tpu.memory_space<vmem>>) attributes {dimension_semantics = [#tpu.dimension_semantics<parallel>], iteration_bounds = array<i64: 1>, scalar_prefetch = 0 : i64, scratch_operands = 0 : i64, tpu.core_type = #tpu.core_type<tc>, window_params = [{pipeline_mode = #tpu.pipeline_mode<synchronous>, transform_indices = @transform_0, window_bounds = array<i64: 256, 256>}, {pipeline_mode = #tpu.pipeline_mode<synchronous>, transform_indices = @transform_1, window_bounds = array<i64: 1, 256>}, {pipeline_mode = #tpu.pipeline_mode<synchronous>, transform_indices = @transform_2, window_bounds = array<i64: 256, 128>}, {pipeline_mode = #tpu.pipeline_mode<synchronous>, transform_indices = @transform_3, window_bounds = array<i64: 1, 128>}, {transform_indices = @transform_4, window_bounds = array<i64: 8, 256>}, {transform_indices = @transform_5, window_bounds = array<i64: 8, 128>}]} {
    %c0 = arith.constant 0 : index
    %c0_0 = arith.constant 0 : index
    %0 = vector.load %arg5[%c0, %c0_0] : memref<8x256xf32, #tpu.memory_space<vmem>>, vector<8x256xf32>
    %c0_1 = arith.constant 0 : index
    %c0_2 = arith.constant 0 : index
    %1 = vector.load %arg1[%c0_1, %c0_2] : memref<256x256xf32, #tpu.memory_space<vmem>>, vector<256x256xf32>
    %cst = arith.constant dense<0.000000e+00> : vector<8x256xf32>
    %2 = tpu.matmul %0, %1, %cst {dimension_numbers = #tpu.dot_dimension_numbers<[1], [0], [0], [1], [0, 0, 1, 1], [], []>} : vector<8x256xf32>, vector<256x256xf32>, vector<8x256xf32> -> vector<8x256xf32>
    %c0_3 = arith.constant 0 : index
    %c0_4 = arith.constant 0 : index
    %3 = vector.load %arg2[%c0_3, %c0_4] : memref<1x256xf32, #tpu.memory_space<vmem>>, vector<1x256xf32>
    %4 = vector.broadcast %3 : vector<1x256xf32> to vector<8x256xf32>
    %5 = arith.addf %2, %4 : vector<8x256xf32>
    %cst_5 = arith.constant 0.000000e+00 : f32
    %6 = vector.broadcast %cst_5 : f32 to vector<8x256xf32>
    %7 = arith.maximumf %5, %6 : vector<8x256xf32>
    %c0_6 = arith.constant 0 : index
    %c0_7 = arith.constant 0 : index
    %8 = vector.load %arg3[%c0_6, %c0_7] : memref<256x128xf32, #tpu.memory_space<vmem>>, vector<256x128xf32>
    %cst_8 = arith.constant dense<0.000000e+00> : vector<8x128xf32>
    %9 = tpu.matmul %7, %8, %cst_8 {dimension_numbers = #tpu.dot_dimension_numbers<[1], [0], [0], [1], [0, 0, 1, 1], [], []>} : vector<8x256xf32>, vector<256x128xf32>, vector<8x128xf32> -> vector<8x128xf32>
    %c0_9 = arith.constant 0 : index
    %c0_10 = arith.constant 0 : index
    %10 = vector.load %arg4[%c0_9, %c0_10] : memref<1x128xf32, #tpu.memory_space<vmem>>, vector<1x128xf32>
    %11 = vector.broadcast %10 : vector<1x128xf32> to vector<8x128xf32>
    %12 = arith.addf %9, %11 : vector<8x128xf32>
    %c0_11 = arith.constant 0 : index
    %c0_12 = arith.constant 0 : index
    %13 = vector.load %arg6[%c0_11, %c0_12] : memref<8x128xf32, #tpu.memory_space<vmem>>, vector<8x128xf32>
    tpu.vector_store %arg6[%c0_11, %c0_12], %12 {strides = array<i32>} : memref<8x128xf32, #tpu.memory_space<vmem>>, vector<8x128xf32>,
    return
  }
  func.func @transform_0(%arg0: i32) -> (i32, i32) {
    %c0_i32 = arith.constant 0 : i32
    %c0_i32_0 = arith.constant 0 : i32
    %c0_i32_1 = arith.constant 0 : i32
    return %c0_i32, %c0_i32_0 : i32, i32
  }
  func.func @transform_1(%arg0: i32) -> (i32, i32) {
    %c0_i32 = arith.constant 0 : i32
    %c0_i32_0 = arith.constant 0 : i32
    %c0_i32_1 = arith.constant 0 : i32
    return %c0_i32, %c0_i32_0 : i32, i32
  }
  func.func @transform_2(%arg0: i32) -> (i32, i32) {
    %c0_i32 = arith.constant 0 : i32
    %c0_i32_0 = arith.constant 0 : i32
    %c0_i32_1 = arith.constant 0 : i32
    return %c0_i32, %c0_i32_0 : i32, i32
  }
  func.func @transform_3(%arg0: i32) -> (i32, i32) {
    %c0_i32 = arith.constant 0 : i32
    %c0_i32_0 = arith.constant 0 : i32
    %c0_i32_1 = arith.constant 0 : i32
    return %c0_i32, %c0_i32_0 : i32, i32
  }
  func.func @transform_4(%arg0: i32) -> (i32, i32) {
    %c0_i32 = arith.constant 0 : i32
    %c0_i32_0 = arith.constant 0 : i32
    return %arg0, %c0_i32 : i32, i32
  }
  func.func @transform_5(%arg0: i32) -> (i32, i32) {
    %c0_i32 = arith.constant 0 : i32
    %c0_i32_0 = arith.constant 0 : i32
    return %arg0, %c0_i32 : i32, i32
  }
}

</mosaic_0001>

<bundles_post_ra>
// kernel: lunar_lander_ann_forward.1
= control target key start
LH: loop header
LB: loop body
LE: loop exit
PB: predicated region body
PF: predicated region fallthrough
CT: control target
= control target key end

     0   :  { %10 = vsyncpa [#allocation3], 0  ;;  %s361_s18 = smov [#allocation2]   ;;  %s604_s0 = inlined_call_operand.vmem [shape: f32[256,256], index: 0, kind: input, shape index: {}]   ;;  %s605_s1 = inlined_call_operand.vmem [shape: f32[1,256], index: 1, kind: input, shape index: {}]   ;;  %s606_s2 = inlined_call_operand.hbm [shape: f32[256,128], index: 2, kind: input, shape index: {}]   ;;  %s607_s3 = inlined_call_operand.vmem [shape: f32[1,128], index: 3, kind: input, shape index: {}]   ;;  %s608_s4 = inlined_call_operand.vmem [shape: f32[8,256], index: 4, kind: input, shape index: {}]   ;;  %s609_s5 = inlined_call_operand.vmem [shape: f32[8,128], index: 5, kind: output, shape index: {}]  }
   0x1   :  { %s20_s19 = sshll.u32 %s361_s18, 4  ;;  %s21_s19 = int_to_ptr.vmem [resolvable:$true] %s20_s19 }
   0x2   :  { %s347_s20 = scalar_lea.vmem %s21_s19, 4096  ;;  %p352_p1 = scmp.lt.s32.totalorder %s21_s19, %s21_s19 }
   0x3   :  { %p348_p0 = scmp.ne.s32.totalorder %s21_s19, %s347_s20  ;;  %p353_p2 = scmp.lt.s32.totalorder %s347_s20, %s347_s20 }
   0x5   :  { %p354_p3 = por %p353_p2, %p352_p1 }
   0x7   :  { %p355_p4 = pnand %p354_p3, %p348_p0 }
   0x9   :  { %358 = shalt.err (!%p355_p4)
}
   0xa   :  { %s362_s21 = smov 128   ;;  %s363_s22 = smov 8  }
   0xb   :  { %26 = dma.hbm_to_vmem [thread:$0]  %s606_s2, 4096, %s21_s19, [#allocation3], %s362_s21, %s362_s21, %s363_s22  }
   0xc   :  { %359 = dma.done.wait [#allocation3], 4096  }
   0xd   :  { %360 = vsyncadd [#allocation3], 4294963200  ;;  %v67_v0 = vld [vmem:[%s604_s0 + $0xf8] sm:$0xff]  ;;  %v66_v1 = vld [vmem:[%s604_s0 + $0xf0] sm:$0xff] }
   0xe   :  { %v65_v2 = vld [vmem:[%s604_s0 + $0xe8] sm:$0xff]  ;;  %112 = vmatprep.subr.mxu0 %v67_v0  ;;  %v64_v3 = vld [vmem:[%s604_s0 + $0xe0] sm:$0xff]  ;;  %v63_v4 = vld [vmem:[%s604_s0 + $0xd8] sm:$0xff] }
   0xf   :  { %113 = vmatpush1.msra.mxu0 %v66_v1  ;;  %v62_v5 = vld [vmem:[%s604_s0 + $0xd0] sm:$0xff]  ;;  %v61_v6 = vld [vmem:[%s604_s0 + $0xc8] sm:$0xff]  ;;  %v60_v7 = vld [vmem:[%s604_s0 + $0xc0] sm:$0xff] }
  0x10   :  { %114 = vmatprep.subr.mxu0 %v65_v2  ;;  %v59_v8 = vld [vmem:[%s604_s0 + $0xb8] sm:$0xff]  ;;  %v58_v9 = vld [vmem:[%s604_s0 + $0xb0] sm:$0xff]  ;;  %v57_v10 = vld [vmem:[%s604_s0 + $0xa8] sm:$0xff] }
  0x11   :  { %115 = vmatpush1.msra.mxu0 %v64_v3  ;;  %v56_v11 = vld [vmem:[%s604_s0 + $0xa0] sm:$0xff]  ;;  %v55_v12 = vld [vmem:[%s604_s0 + $0x98] sm:$0xff]  ;;  %v54_v13 = vld [vmem:[%s604_s0 + $0x90] sm:$0xff] }
  0x12   :  { %116 = vmatprep.subr.mxu0 %v63_v4  ;;  %v53_v14 = vld [vmem:[%s604_s0 + $0x88] sm:$0xff]  ;;  %v52_v15 = vld [vmem:[%s604_s0 + $0x80] sm:$0xff]  ;;  %v51_v16 = vld [vmem:[%s604_s0 + $0x78] sm:$0xff] }
  0x13   :  { %117 = vmatpush1.msra.mxu0 %v62_v5  ;;  %v50_v17 = vld [vmem:[%s604_s0 + $0x70] sm:$0xff]  ;;  %v49_v18 = vld [vmem:[%s604_s0 + $0x68] sm:$0xff]  ;;  %v48_v19 = vld [vmem:[%s604_s0 + $0x60] sm:$0xff] }
  0x14   :  { %118 = vmatprep.subr.mxu0 %v61_v6  ;;  %v47_v20 = vld [vmem:[%s604_s0 + $0x58] sm:$0xff]  ;;  %v46_v21 = vld [vmem:[%s604_s0 + $0x50] sm:$0xff]  ;;  %v45_v22 = vld [vmem:[%s604_s0 + $0x48] sm:$0xff] }
  0x15   :  { %119 = vmatpush1.msra.mxu0 %v60_v7  ;;  %v44_v23 = vld [vmem:[%s604_s0 + $0x40] sm:$0xff]  ;;  %v43_v24 = vld [vmem:[%s604_s0 + $0x38] sm:$0xff]  ;;  %v35_v25 = vld [vmem:[%s608_s4 + $0x8] sm:$0xff] }
  0x16   :  { %120 = vmatprep.subr.mxu0 %v59_v8  ;;  %176 = vmatprep.mubr.f32.mxu0 %v35_v25  ;;  %v216_v26 = vld [vmem:[#allocation2 + $0xf8] sm:$0xff]  ;;  %v215_v28 = vld [vmem:[#allocation2 + $0xf0] sm:$0xff]  ;;  %v41_v31 = vld [vmem:[%s604_s0 + $0x28] sm:$0xff] }
  0x17   :  { %121 = vmatpush1.msra.mxu0 %v58_v9  ;;  %v200_v27 = vld [vmem:[#allocation2 + $0x78] sm:$0xff]  ;;  %v42_v29 = vld [vmem:[%s604_s0 + $0x30] sm:$0xff]  ;;  %301 = vmatprep.subr.mxu1 %v216_v26  ;;  %v214_v32 = vld [vmem:[#allocation2 + $0xe8] sm:$0xff] }
  0x18   :  { %122 = vmatprep.subr.mxu0 %v57_v10  ;;  %v199_v30 = vld [vmem:[#allocation2 + $0x70] sm:$0xff]  ;;  %302 = vmatpush3.msra.mxu1 %v200_v27  ;;  %v40_v33 = vld [vmem:[%s604_s0 + $0x20] sm:$0xff]  ;;  %v198_v34 = vld [vmem:[#allocation2 + $0x68] sm:$0xff] }
  0x19   :  { %123 = vmatpush1.msra.mxu0 %v56_v11  ;;  %303 = vmatprep.subr.mxu1 %v215_v28  ;;  %v39_v35 = vld [vmem:[%s604_s0 + $0x18] sm:$0xff]  ;;  %v213_v36 = vld [vmem:[#allocation2 + $0xe0] sm:$0xff]  ;;  %v38_v37 = vld [vmem:[%s604_s0 + $0x10] sm:$0xff] }
  0x1a   :  { %124 = vmatprep.subr.mxu0 %v55_v12  ;;  %304 = vmatpush3.msra.mxu1 %v199_v30  ;;  %v197_v38 = vld [vmem:[#allocation2 + $0x60] sm:$0xff]  ;;  %v37_v39 = vld [vmem:[%s604_s0 + $0x8] sm:$0xff]  ;;  %v212_v40 = vld [vmem:[#allocation2 + $0xd8] sm:$0xff] }
  0x1b   :  { %125 = vmatpush1.msra.mxu0 %v54_v13  ;;  %305 = vmatprep.subr.mxu1 %v214_v32  ;;  %v36_v41 = vld [vmem:[%s604_s0] sm:$0xff]  ;;  %v196_v42 = vld [vmem:[#allocation2 + $0x58] sm:$0xff]  ;;  %v211_v44 = vld [vmem:[#allocation2 + $0xd0] sm:$0xff] }
  0x1c   :  { %126 = vmatprep.subr.mxu0 %v53_v14  ;;  %306 = vmatpush3.msra.mxu1 %v198_v34  ;;  %v99_v43 = vld [vmem:[%s604_s0 + $0x1f8] sm:$0xff]  ;;  %v98_v45 = vld [vmem:[%s604_s0 + $0x1f0] sm:$0xff]  ;;  %v97_v47 = vld [vmem:[%s604_s0 + $0x1e8] sm:$0xff]  ;;  %v102_v34 = vlaneseq }
  0x1d   :  { %127 = vmatpush1.msra.mxu0 %v52_v15  ;;  %307 = vmatprep.subr.mxu1 %v213_v36  ;;  %v195_v46 = vld [vmem:[#allocation2 + $0x50] sm:$0xff]  ;;  %v210_v48 = vld [vmem:[#allocation2 + $0xc8] sm:$0xff]  ;;  %v96_v49 = vld [vmem:[%s604_s0 + $0x1e0] sm:$0xff] }
  0x1e   :  { %128 = vmatprep.subr.mxu0 %v51_v16  ;;  %308 = vmatpush3.msra.mxu1 %v197_v38  ;;  %v194_v50 = vld [vmem:[#allocation2 + $0x48] sm:$0xff]  ;;  %v95_v51 = vld [vmem:[%s604_s0 + $0x1d8] sm:$0xff]  ;;  %v209_v52 = vld [vmem:[#allocation2 + $0xc0] sm:$0xff] }
  0x1f   :  { %129 = vmatpush1.msra.mxu0 %v50_v17  ;;  %309 = vmatprep.subr.mxu1 %v212_v40  ;;  %v94_v53 = vld [vmem:[%s604_s0 + $0x1d0] sm:$0xff]  ;;  %v193_v54 = vld [vmem:[#allocation2 + $0x40] sm:$0xff]  ;;  %v93_v55 = vld [vmem:[%s604_s0 + $0x1c8] sm:$0xff] }
  0x20   :  { %130 = vmatprep.subr.mxu0 %v49_v18  ;;  %310 = vmatpush3.msra.mxu1 %v196_v42  ;;  %v208_v56 = vld [vmem:[#allocation2 + $0xb8] sm:$0xff]  ;;  %v92_v57 = vld [vmem:[%s604_s0 + $0x1c0] sm:$0xff]  ;;  %v207_v60 = vld [vmem:[#allocation2 + $0xb0] sm:$0xff] }
  0x21   :  { %131 = vmatpush1.msra.mxu0 %v48_v19  ;;  %311 = vmatprep.subr.mxu1 %v211_v44  ;;  %v192_v58 = vld [vmem:[#allocation2 + $0x38] sm:$0xff]  ;;  %v90_v61 = vld [vmem:[%s604_s0 + $0x1b0] sm:$0xff]  ;;  %v89_v63 = vld [vmem:[%s604_s0 + $0x1a8] sm:$0xff] }
  0x22   :  { %132 = vmatprep.subr.mxu0 %v47_v20  ;;  %312 = vmatpush3.msra.mxu1 %v195_v46  ;;  %v91_v59 = vld [vmem:[%s604_s0 + $0x1b8] sm:$0xff]  ;;  %v191_v62 = vld [vmem:[#allocation2 + $0x30] sm:$0xff]  ;;  %v206_v0 = vld [vmem:[#allocation2 + $0xa8] sm:$0xff] }
  0x23   :  { %133 = vmatpush1.msra.mxu0 %v46_v21  ;;  %313 = vmatprep.subr.mxu1 %v210_v48  ;;  %v88_v1 = vld [vmem:[%s604_s0 + $0x1a0] sm:$0xff]  ;;  %v190_v2 = vld [vmem:[#allocation2 + $0x28] sm:$0xff]  ;;  %v87_v3 = vld [vmem:[%s604_s0 + $0x198] sm:$0xff] }
  0x24   :  { %134 = vmatprep.subr.mxu0 %v45_v22  ;;  %314 = vmatpush3.msra.mxu1 %v194_v50  ;;  %v205_v4 = vld [vmem:[#allocation2 + $0xa0] sm:$0xff]  ;;  %v86_v5 = vld [vmem:[%s604_s0 + $0x190] sm:$0xff]  ;;  %v85_v7 = vld [vmem:[%s604_s0 + $0x188] sm:$0xff] }
  0x25   :  { %135 = vmatpush1.msra.mxu0 %v44_v23  ;;  %315 = vmatprep.subr.mxu1 %v209_v52  ;;  %v189_v6 = vld [vmem:[#allocation2 + $0x20] sm:$0xff]  ;;  %v83_v9 = vld [vmem:[%s604_s0 + $0x178] sm:$0xff]  ;;  %v82_v10 = vld [vmem:[%s604_s0 + $0x170] sm:$0xff] }
  0x26   :  { %136 = vmatprep.subr.mxu0 %v43_v24  ;;  %316 = vmatpush3.msra.mxu1 %v193_v54  ;;  %v84_v8 = vld [vmem:[%s604_s0 + $0x180] sm:$0xff]  ;;  %v81_v11 = vld [vmem:[%s604_s0 + $0x168] sm:$0xff]  ;;  %v79_v13 = vld [vmem:[%s604_s0 + $0x158] sm:$0xff] }
  0x27   :  { %137 = vmatpush1.msra.mxu0 %v42_v29  ;;  %317 = vmatprep.subr.mxu1 %v208_v56  ;;  %v80_v12 = vld [vmem:[%s604_s0 + $0x160] sm:$0xff]  ;;  %v78_v14 = vld [vmem:[%s604_s0 + $0x150] sm:$0xff]  ;;  %v77_v15 = vld [vmem:[%s604_s0 + $0x148] sm:$0xff] }
  0x28   :  { %138 = vmatprep.subr.mxu0 %v41_v31  ;;  %318 = vmatpush3.msra.mxu1 %v192_v58  ;;  %v76_v16 = vld [vmem:[%s604_s0 + $0x140] sm:$0xff]  ;;  %v75_v17 = vld [vmem:[%s604_s0 + $0x138] sm:$0xff]  ;;  %v74_v18 = vld [vmem:[%s604_s0 + $0x130] sm:$0xff] }
  0x29   :  { %139 = vmatpush1.msra.mxu0 %v40_v33  ;;  %319 = vmatprep.subr.mxu1 %v207_v60  ;;  %v73_v19 = vld [vmem:[%s604_s0 + $0x128] sm:$0xff]  ;;  %v72_v20 = vld [vmem:[%s604_s0 + $0x120] sm:$0xff]  ;;  %v71_v21 = vld [vmem:[%s604_s0 + $0x118] sm:$0xff] }
  0x2a   :  { %140 = vmatprep.subr.mxu0 %v39_v35  ;;  %320 = vmatpush3.msra.mxu1 %v191_v62  ;;  %v70_v22 = vld [vmem:[%s604_s0 + $0x110] sm:$0xff]  ;;  %v69_v23 = vld [vmem:[%s604_s0 + $0x108] sm:$0xff]  ;;  %v68_v24 = vld [vmem:[%s604_s0 + $0x100] sm:$0xff]  ;;  %v103_v35 = vshrl.u32 %v102_v34, 7 }
  0x2b   :  { %141 = vmatpush1.msra.mxu0 %v38_v37  ;;  %321 = vmatprep.subr.mxu1 %v206_v0  ;;  %v34_v25 = vld [vmem:[%s608_s4] sm:$0xff]  ;;  %v204_v26 = vld [vmem:[#allocation2 + $0x98] sm:$0xff]  ;;  %v203_v28 = vld [vmem:[#allocation2 + $0x90] sm:$0xff] }
  0x2c   :  { %142 = vmatprep.subr.mxu0 %v37_v39  ;;  %322 = vmatpush3.msra.mxu1 %v190_v2  ;;  %v188_v27 = vld [vmem:[#allocation2 + $0x18] sm:$0xff]  ;;  %v187_v29 = vld [vmem:[#allocation2 + $0x10] sm:$0xff]  ;;  %v202_v30 = vld [vmem:[#allocation2 + $0x88] sm:$0xff]  ;;  %v104_v36 = vsub.s32 0, %v103_v35  ;;  %v108_v38 = vsub.s32 1, %v103_v35 }
  0x2d   :  { %143 = vmatpush1.msra.mxu0 %v36_v41  ;;  %323 = vmatprep.subr.mxu1 %v205_v4  ;;  %v186_v31 = vld [vmem:[#allocation2 + $0x8] sm:$0xff]  ;;  %v201_v32 = vld [vmem:[#allocation2 + $0x80] sm:$0xff] }
  0x2e   :  { %144 = vmatprep.subr.mxu0 %v99_v43  ;;  %324 = vmatpush3.msra.mxu1 %v189_v6  ;;  %v185_v33 = vld [vmem:[#allocation2] sm:$0xff] }
  0x2f   :  { %145 = vmatpush2.msra.mxu0 %v98_v45  ;;  %325 = vmatprep.subr.mxu1 %v204_v26  ;;  %v100_v37 = vld [vmem:[%s605_s1] sm:$0x3] }
  0x30   :  { %146 = vmatprep.subr.mxu0 %v97_v47  ;;  %326 = vmatpush3.msra.mxu1 %v188_v27  ;;  %v105_v39 = vrot.slane %v100_v37, %v104_v36  ;;  %v109_v40 = vrot.slane %v100_v37, %v108_v38  ;;  %v300_v48 = vld [vmem:[%s607_s3] ss:$0 sm:$0xff] }
  0x31   :  { %147 = vmatpush2.msra.mxu0 %v96_v49  ;;  %327 = vmatprep.subr.mxu1 %v203_v28 }
  0x32   :  { %148 = vmatprep.subr.mxu0 %v95_v51  ;;  %328 = vmatpush3.msra.mxu1 %v187_v29 }
  0x33   :  { %149 = vmatpush2.msra.mxu0 %v94_v53  ;;  %329 = vmatprep.subr.mxu1 %v202_v30 }
  0x34   :  { %150 = vmatprep.subr.mxu0 %v93_v55  ;;  %330 = vmatpush3.msra.mxu1 %v186_v31 }
  0x35   :  { %151 = vmatpush2.msra.mxu0 %v92_v57  ;;  %331 = vmatprep.subr.mxu1 %v201_v32 }
  0x36   :  { %152 = vmatprep.subr.mxu0 %v91_v59  ;;  %332 = vmatpush3.msra.mxu1 %v185_v33 }
  0x37   :  { %153 = vmatpush2.msra.mxu0 %v90_v61 }
  0x38   :  { %154 = vmatprep.subr.mxu0 %v89_v63 }
  0x39   :  { %155 = vmatpush2.msra.mxu0 %v88_v1 }
  0x3a   :  { %156 = vmatprep.subr.mxu0 %v87_v3 }
  0x3b   :  { %157 = vmatpush2.msra.mxu0 %v86_v5 }
  0x3c   :  { %158 = vmatprep.subr.mxu0 %v85_v7 }
  0x3d   :  { %159 = vmatpush2.msra.mxu0 %v84_v8 }
  0x3e   :  { %160 = vmatprep.subr.mxu0 %v83_v9 }
  0x3f   :  { %161 = vmatpush2.msra.mxu0 %v82_v10 }
  0x40   :  { %162 = vmatprep.subr.mxu0 %v81_v11 }
  0x41   :  { %163 = vmatpush2.msra.mxu0 %v80_v12 }
  0x42   :  { %164 = vmatprep.subr.mxu0 %v79_v13 }
  0x43   :  { %165 = vmatpush2.msra.mxu0 %v78_v14 }
  0x44   :  { %166 = vmatprep.subr.mxu0 %v77_v15 }
  0x45   :  { %167 = vmatpush2.msra.mxu0 %v76_v16 }
  0x46   :  { %168 = vmatprep.subr.mxu0 %v75_v17 }
  0x47   :  { %169 = vmatpush2.msra.mxu0 %v74_v18 }
  0x48   :  { %170 = vmatprep.subr.mxu0 %v73_v19 }
  0x49   :  { %171 = vmatpush2.msra.mxu0 %v72_v20 }
  0x4a   :  { %172 = vmatprep.subr.mxu0 %v71_v21 }
  0x4b   :  { %173 = vmatpush2.msra.mxu0 %v70_v22 }
  0x4c   :  { %174 = vmatprep.subr.mxu0 %v69_v23 }
  0x4d   :  { %175 = vmatpush2.msra.mxu0 %v68_v24 }
  0x4e   :  { %177 = vmatmul.mubr.f32.vlgmr.msra.gmra.mxu0 %v34_v25 }
 0x10e   :  { %v178_v41 = vpop.f32.mrf.mxu0 }
 0x10f   :  { %v179_v42 = vadd.f32 %v178_v41, %v105_v39 }
 0x110   :  { %v180_v43 = vpop.f32.mrf.mxu0 }
 0x111   :  { %v181_v44 = vadd.f32 %v180_v43, %v109_v40  ;;  %v183_v46 = vmax.f32 %v179_v42, 0.0 }
 0x113   :  { %v184_v45 = vmax.f32 %v181_v44, 0.0 }
 0x115   :  { %288 = vmatprep.mubr.f32.mxu1 %v184_v45 }
 0x116   :  { %289 = vmatmul.mubr.f32.vlgmr.msra.gmra.mxu1 %v183_v46 }
 0x1d6   :  { %v333_v47 = vpop.f32.mrf.mxu1 }
 0x1d8   :  { %v334_v49 = vpop.f32.mrf.mxu1 }
 0x1d9   :  { %v335_v50 = vadd.f32 %v334_v49, %v333_v47 }
 0x1db   :  { %v291_v51 = vadd.f32 %v335_v50, %v300_v48 }
 0x1dd   :  { %294 = vst [vmem:[%s609_s5] sm:$0xff] %v291_v51 }
 0x1de   :  { %299 = vsyncpa [#allocation3], 1 }

</bundles_post_ra>
